<compile_context>
chip_gen: v7x
topology: tpu7x:2x2x1
jax: 0.10.0
libtpu: 0.0.40
codegen_flags: <defaults>
</compile_context>

<pallas_src>
import functools

import numpy as np
import jax
import jax.numpy as jnp
from jax.experimental import pallas as pl
from jax.experimental.pallas import tpu as pltpu

# Backward-only clamps from the reference (kept for parity; backward is not
# implemented here).
MAX_DV = 100.0
MIN_DV = 0.001

_LANE = 128
_SUBLANE = 8


def _cdiv(a, b):
    return -(-a // b)


def _round_up(x, m):
    return (x + m - 1) // m * m


# ----------------------------------------------------------------------------
# Generation-aware VMEM budget / tiling.
# ----------------------------------------------------------------------------
def _vmem_budget():
    """(scoped vmem_limit_bytes, per-block byte target) for this chip."""
    vmem = None
    try:
        vmem = int(getattr(pltpu.get_tpu_info(), "vmem_capacity_bytes", 0)) or None
    except Exception:  # query unavailable -> conservative defaults
        vmem = None
    if vmem is None:
        return 32 << 20, 2 << 20
    if vmem <= (64 << 20):          # v7x-class: 64 MiB VMEM per TensorCore
        return 44 << 20, 4 << 20
    return 64 << 20, 4 << 20        # v5e / v6e: 128 MiB physical VMEM


def _lane_view_shape(shape):
    """Pick a lane-dense (rows, cols) 2-D view of an array with `shape`
    (trailing time column already dropped).  Returns (rows, cols, pad);
    pad=False means the view is a *free* reshape of the original data."""
    n = int(np.prod(shape)) if len(shape) else 1
    last = int(shape[-1]) if len(shape) else 1
    if len(shape) >= 2 and last % _LANE == 0 and last <= 8192:
        return n // last, last, False            # natural view, free reshape
    if n % _LANE == 0:
        for c in (2048, 1024, 512, 256, 128):    # flat view, still free
            if n % c == 0:
                return n // c, c, False
    # Ragged neuron count: pad to full 128-lane rows (copies; not hit by
    # lane-aligned neuron groups such as the reference configuration).
    return _cdiv(n, _LANE), _LANE, True


def _choose_tiling(rows, cols, n_bufs, limit, target, itemsize=4):
    """Rows per block (multiple of 8 unless a single full block), #blocks."""
    # Per-block budget: ~target, clamped so `n_bufs` double-buffered operands
    # stay inside ~3/4 of the scoped VMEM limit.
    per_block = max(_SUBLANE * cols * itemsize,
                    min(target, (limit * 3 // 4) // (2 * n_bufs)))
    tr = max(_SUBLANE, (per_block // (cols * itemsize)) // _SUBLANE * _SUBLANE)
    if rows <= tr:
        if rows * cols * itemsize > (4 << 20) and rows >= 2 * _SUBLANE:
            # Big enough to matter: keep >= 2 blocks so the "parallel" grid
            # axis can be sharded across both v7x TensorCores.
            tr = _round_up(_cdiv(rows, 2), _SUBLANE)
        else:
            return rows, 1                       # single full-array block
    return tr, _cdiv(rows, tr)


# ----------------------------------------------------------------------------
# Kernels: pure VPU elementwise on lane-dense (tr, cols) blocks.
# p_ref (SMEM, f32[3]) = [tv_s, te_s, threshold].
# ----------------------------------------------------------------------------
def _spike_first_kernel(p_ref, x_ref, v_ref, s_ref):
    tv_s = p_ref[0]
    thr = p_ref[2]
    v = x_ref[...].astype(jnp.float32) * tv_s
    v_ref[...] = v
    s_ref[...] = (v > thr).astype(s_ref.dtype)


def _spike_step_kernel(p_ref, vprev_ref, x_ref, v_ref, s_ref):
    tv_s = p_ref[0]
    te_s = p_ref[1]
    thr = p_ref[2]
    v_prev = vprev_ref[...]
    # The history term is the previous step's spike, which by definition is
    # (v_prev > threshold).float(); recomputing it here (one VPU compare) is
    # bit-identical and removes the history read from HBM entirely.
    hist = (v_prev > thr).astype(jnp.float32)
    v = v_prev + x_ref[...].astype(jnp.float32) * tv_s + hist * te_s
    v_ref[...] = v
    s_ref[...] = (v > thr).astype(s_ref.dtype)


def _block_specs(tr, cols):
    tile = pl.BlockSpec((tr, cols), lambda i: (i, 0))
    smem = pl.BlockSpec(memory_space=pltpu.MemorySpace.SMEM)
    return smem, tile


@functools.partial(jax.jit, static_argnames=("tr", "n_blocks", "vmem_limit"))
def _spike_first_call(params, x2d, *, tr, n_blocks, vmem_limit):
    rows, cols = x2d.shape
    smem, tile = _block_specs(tr, cols)
    out = jax.ShapeDtypeStruct((rows, cols), jnp.float32)
    return pl.pallas_call(
        _spike_first_kernel,
        out_shape=(out, out),
        grid_spec=pltpu.PrefetchScalarGridSpec(
            num_scalar_prefetch=0,
            grid=(n_blocks,),
            in_specs=[smem, tile],
            out_specs=(tile, tile)),
        compiler_params=pltpu.CompilerParams(
            dimension_semantics=("parallel",),
            vmem_limit_bytes=vmem_limit),
    )(params, x2d)


@functools.partial(jax.jit, static_argnames=("tr", "n_blocks", "vmem_limit"))
def _spike_step_call(params, v_prev, x2d, *, tr, n_blocks, vmem_limit):
    rows, cols = x2d.shape
    smem, tile = _block_specs(tr, cols)
    out = jax.ShapeDtypeStruct((rows, cols), jnp.float32)
    return pl.pallas_call(
        _spike_step_kernel,
        out_shape=(out, out),
        grid_spec=pltpu.PrefetchScalarGridSpec(
            num_scalar_prefetch=0,
            grid=(n_blocks,),
            in_specs=[smem, tile, tile],
            out_specs=(tile, tile)),
        compiler_params=pltpu.CompilerParams(
            dimension_semantics=("parallel",),
            vmem_limit_bytes=vmem_limit),
    )(params, v_prev, x2d)


# ----------------------------------------------------------------------------
# Module (forward pass only).
# ----------------------------------------------------------------------------
class SpikePropUnit:
    """JAX/Pallas port of SpikePropUnit (forward only, default SRM templates,
    istrain_neurparam == 0)."""

    def __init__(self, shape, name=None, threshold=1.0, n_step=1000,
                 tau_m=10.0, tau_s=6.0, dt=0.1):
        self.name = name
        self.shape = shape
        self.num = int(np.prod(shape))
        self.dt = dt
        self.n_step = n_step
        self.threshold = float(threshold)
        self.tau_m = tau_m
        self.tau_s = tau_s

        # Default SRM templates (host-side float32, same formulas as torch).
        tt = (np.arange(1, n_step + 1, dtype=np.float32)
              * np.float32(dt)).reshape(1, 1, -1)
        self.tv = ((np.exp(-tt / tau_m) - np.exp(-tt / tau_s))
                   / (tau_m - tau_s)).astype(np.float32)
        self.dv = ((np.exp(-tt / tau_s) / tau_s - np.exp(-tt / tau_m) / tau_m)
                   / (tau_m - tau_s)).astype(np.float32)
        self.te = (-np.exp(-tt / tau_m)).astype(np.float32)
        self.de = (np.exp(-tt / tau_m) / tau_m).astype(np.float32)

        self.clear()

    def clear(self):
        self.inputs_w_list = []
        self.inputs_t_list = []
        self.history_output_list = []
        self._step = 0
        self._v = None        # running membrane accumulator, (rows, cols) f32
        self._layout = None   # (rows, cols, pad, tr, n_blocks, vmem_limit)

    def forward(self, input_w, input_t):
        if int(input_t.shape[-1]) != 1:
            # TODO(synk): the reference NeuronFunc's final .view() is only
            # valid for a single time column; multi-column calls fail there
            # too, so they are rejected here instead of silently diverging.
            raise NotImplementedError("input_t must have a trailing time dim of 1")
        if self._step >= self.n_step:
            raise ValueError("ran more steps than the SRM template length n_step")

        # Kept only for parity with the reference bookkeeping / backward.
        # TODO(synk): NeuronFunc.backward (surrogate gradients via current_dv
        # with MIN_DV/MAX_DV clamps) is not part of the forward pass and is
        # not implemented here.
        self.inputs_w_list.append(input_w)
        self.inputs_t_list.append(input_t)
        if self._step == 0:
            self.history_output_list.append(jnp.zeros_like(input_w))

        lead_shape = tuple(int(d) for d in input_t.shape[:-1])
        n = int(np.prod(lead_shape)) if lead_shape else 1
        if self._layout is None:
            rows, cols, pad = _lane_view_shape(lead_shape)
            limit, target = _vmem_budget()
            # Worst case per step: 2 tiled inputs + 2 tiled outputs.
            tr, n_blocks = _choose_tiling(rows, cols, n_bufs=4,
                                          limit=limit, target=target)
            self._layout = (rows, cols, pad, tr, n_blocks, limit)
        rows, cols, pad, tr, n_blocks, vmem_limit = self._layout

        if pad:
            flat = input_t.reshape(-1)
            x2d = jnp.pad(flat, (0, rows * cols - n)).reshape(rows, cols)
        else:
            x2d = input_t.reshape(rows, cols)   # free view (trailing dim == 1)

        s = self._step
        params = jnp.array([self.tv[0, 0, s], self.te[0, 0, s], self.threshold],
                           dtype=jnp.float32)

        if s == 0:
            v, spike2d = _spike_first_call(params, x2d, tr=tr,
                                           n_blocks=n_blocks,
                                           vmem_limit=vmem_limit)
        else:
            v, spike2d = _spike_step_call(params, self._v, x2d, tr=tr,
                                          n_blocks=n_blocks,
                                          vmem_limit=vmem_limit)
        self._v = v
        self._step += 1

        if pad:
            spike2d = spike2d.reshape(-1)[:n]
        # Reference returns current_spike.view(old_shape + [1]); for the only
        # well-defined case (one time column per call) that is the per-call
        # input shape + (1,).
        output = spike2d.reshape(tuple(input_t.shape) + (1,))
        self.history_output_list.append(output)
        return output

    __call__ = forward


if __name__ == "__main__":
    key = jax.random.PRNGKey(0)
    kw, kt0, kt1 = jax.random.split(key, 3)

    # 1-D neuron group: 1024 neurons, batch = 2, one time column per call
    # (the configuration the PyTorch reference forward supports).
    batch = 2
    group_shape = (1024,)
    in_shape = (batch,) + group_shape + (1,)

    input_w = jax.random.uniform(kw, in_shape, dtype=jnp.float32)
    input_t0 = jax.random.uniform(kt0, in_shape, dtype=jnp.float32,
                                  minval=0.0, maxval=1200.0)
    input_t1 = jax.random.uniform(kt1, in_shape, dtype=jnp.float32,
                                  minval=0.0, maxval=1200.0)

    unit = SpikePropUnit(shape=group_shape, threshold=1.0, n_step=1000,
                         tau_m=10.0, tau_s=6.0, dt=0.1)

    out0 = unit(input_w, input_t0)          # first step (zero history)
    out1 = unit(input_w, input_t1)          # steady-state recurrence step
    out1 = jax.block_until_ready(out1)

    assert out0.shape == in_shape + (1,), out0.shape
    assert out1.shape == in_shape + (1,), out1.shape
    assert out0.dtype == jnp.float32 and out1.dtype == jnp.float32

    # Host-side float32 reference of the same semantics.
    tv = unit.tv[0, 0]
    te = unit.te[0, 0]
    thr = np.float32(unit.threshold)
    x0 = np.asarray(input_t0)[..., 0]
    x1 = np.asarray(input_t1)[..., 0]
    v0 = (x0 * tv[0]).astype(np.float32)
    ref0 = (v0 > thr).astype(np.float32)
    v1 = (v0 + x1 * tv[1] + ref0 * te[1]).astype(np.float32)
    ref1 = (v1 > thr).astype(np.float32)

    got0 = np.asarray(out0).reshape(ref0.shape)
    got1 = np.asarray(out1).reshape(ref1.shape)

    # Step 0 is a single f32 multiply + compare: exact.
    np.testing.assert_array_equal(got0, ref0)
    # Step 1: allow disagreement only where the membrane value is within f32
    # rounding distance of the threshold (kernel vs host 3-term sum may
    # differ by <1 ulp).
    disagree = got1 != ref1
    assert not np.any(disagree & (np.abs(v1 - thr) > 1e-4)), "step-1 spikes mismatch"

    frac = float(got0.mean())
    assert 0.0 < frac < 1.0   # some, but not all, neurons spiked
    print("KERNEL_OK")
</pallas_src>

<mosaic_0001>
module attributes {stable_mosaic.version = 11 : i64} {
  func.func @_spike_first_kernel(%arg0: i32, %arg1: memref<3xf32, #tpu.memory_space<smem>>, %arg2: memref<2x1024xf32, #tpu.memory_space<vmem>>, %arg3: memref<2x1024xf32, #tpu.memory_space<vmem>>, %arg4: memref<2x1024xf32, #tpu.memory_space<vmem>>) attributes {dimension_semantics = [#tpu.dimension_semantics<parallel>], iteration_bounds = array<i64: 1>, scalar_prefetch = 0 : i64, scratch_operands = 0 : i64, tpu.core_type = #tpu.core_type<tc>, window_params = [{transform_indices = @transform_0, window_bounds = array<i64: 3>}, {transform_indices = @transform_1, window_bounds = array<i64: 2, 1024>}, {transform_indices = @transform_2, window_bounds = array<i64: 2, 1024>}, {transform_indices = @transform_3, window_bounds = array<i64: 2, 1024>}]} {
    %c0 = arith.constant 0 : index
    %0 = memref.load %arg1[%c0] : memref<3xf32, #tpu.memory_space<smem>>
    %c2 = arith.constant 2 : index
    %1 = memref.load %arg1[%c2] : memref<3xf32, #tpu.memory_space<smem>>
    %c0_0 = arith.constant 0 : index
    %c0_1 = arith.constant 0 : index
    %2 = vector.load %arg2[%c0_0, %c0_1] : memref<2x1024xf32, #tpu.memory_space<vmem>>, vector<2x1024xf32>
    %3 = vector.broadcast %0 : f32 to vector<2x1024xf32>
    %4 = arith.mulf %2, %3 : vector<2x1024xf32>
    %c0_2 = arith.constant 0 : index
    %c0_3 = arith.constant 0 : index
    %5 = vector.load %arg3[%c0_2, %c0_3] : memref<2x1024xf32, #tpu.memory_space<vmem>>, vector<2x1024xf32>
    tpu.vector_store %arg3[%c0_2, %c0_3], %4 {strides = array<i32>} : memref<2x1024xf32, #tpu.memory_space<vmem>>, vector<2x1024xf32>,
    %6 = vector.broadcast %1 : f32 to vector<2x1024xf32>
    %7 = arith.cmpf ogt, %4, %6 : vector<2x1024xf32>
    %8 = arith.extui %7 : vector<2x1024xi1> to vector<2x1024xi32>
    %9 = arith.sitofp %8 : vector<2x1024xi32> to vector<2x1024xf32>
    %c0_4 = arith.constant 0 : index
    %c0_5 = arith.constant 0 : index
    %10 = vector.load %arg4[%c0_4, %c0_5] : memref<2x1024xf32, #tpu.memory_space<vmem>>, vector<2x1024xf32>
    tpu.vector_store %arg4[%c0_4, %c0_5], %9 {strides = array<i32>} : memref<2x1024xf32, #tpu.memory_space<vmem>>, vector<2x1024xf32>,
    return
  }
  func.func @transform_0(%arg0: i32) -> i32 {
    %c0_i32 = arith.constant 0 : i32
    %c0_i32_0 = arith.constant 0 : i32
    return %c0_i32 : i32
  }
  func.func @transform_1(%arg0: i32) -> (i32, i32) {
    %c0_i32 = arith.constant 0 : i32
    %c0_i32_0 = arith.constant 0 : i32
    return %arg0, %c0_i32 : i32, i32
  }
  func.func @transform_2(%arg0: i32) -> (i32, i32) {
    %c0_i32 = arith.constant 0 : i32
    %c0_i32_0 = arith.constant 0 : i32
    return %arg0, %c0_i32 : i32, i32
  }
  func.func @transform_3(%arg0: i32) -> (i32, i32) {
    %c0_i32 = arith.constant 0 : i32
    %c0_i32_0 = arith.constant 0 : i32
    return %arg0, %c0_i32 : i32, i32
  }
}

</mosaic_0001>

<bundles_post_ra>
// kernel: _spike_first_call.1
= control target key start
LH: loop header
LB: loop body
LE: loop exit
PB: predicated region body
PF: predicated region fallthrough
CT: control target
= control target key end

     0   :  { %9 = vsyncpa [#allocation5], 0  ;;  %s258_s0 = inlined_call_operand.hbm [shape: f32[3], index: 0, kind: input, shape index: {}]   ;;  %s259_s1 = inlined_call_operand.hbm [shape: f32[2,1024], index: 1, kind: input, shape index: {}]   ;;  %s260_s2 = inlined_call_operand.hbm [shape: f32[2,1024], index: 2, kind: output, shape index: {0}]   ;;  %s261_s3 = inlined_call_operand.hbm [shape: f32[2,1024], index: 3, kind: output, shape index: {1}]  }
   0x1   :  { %10 = vsyncpa [#allocation3], 0 }
   0x2   :  { %11 = vsyncpa [#allocation4], 0 }
   0x3   :  { %12 = vsyncpa [#allocation9], 0  ;;  %s94_s14 = scalar_lea.hbm %s258_s0, 16 }
   0x4   :  { %p95_p0 = scmp.ne.s32.totalorder %s258_s0, %s94_s14  ;;  %p98_p1 = scmp.lt.u32.totalorder %s94_s14, %s258_s0 }
   0x6   :  { %p100_p2 = pnand %p98_p1, %p95_p0 }
   0x8   :  { %103 = shalt.err (!%p100_p2)
}
   0x9   :  { %s178_s19 = smov [#allocation2]   ;;  %s179_s22 = smov [#allocation6]  }
   0xa   :  { %20 = dma.hbm_to_smem %s258_s0, 16, %s178_s19, [#allocation5]  }
   0xb   :  { %s27_s23 = sshll.u32 %s179_s22, 4  ;;  %s104_s26 = scalar_lea.hbm %s259_s1, 256  ;;  %s28_s23 = int_to_ptr.vmem [resolvable:$true] %s27_s23 }
   0xc   :  { %p105_p3 = scmp.ne.s32.totalorder %s259_s1, %s104_s26  ;;  %p108_p4 = scmp.lt.u32.totalorder %s104_s26, %s259_s1 }
   0xe   :  { %p110_p5 = pnand %p108_p4, %p105_p3 }
  0x10   :  { %113 = shalt.err (!%p110_p5)
}
  0x11   :  { %s114_s4 = scalar_lea.vmem %s28_s23, 256  ;;  %p119_p7 = scmp.lt.s32.totalorder %s28_s23, %s28_s23 }
  0x12   :  { %p115_p6 = scmp.ne.s32.totalorder %s28_s23, %s114_s4  ;;  %p120_p8 = scmp.lt.s32.totalorder %s114_s4, %s114_s4 }
  0x14   :  { %p121_p9 = por %p120_p8, %p119_p7 }
  0x16   :  { %p122_p10 = pnand %p121_p9, %p115_p6 }
  0x18   :  { %125 = shalt.err (!%p122_p10)
}
  0x19   :  { %30 = dma.hbm_to_vmem [thread:$0]  %s259_s1, 256, %s28_s23, [#allocation3]  }
  0x1a   :  { %170 = dma.done.wait [#allocation5], 16  }
  0x1b   :  { %171 = vsyncadd [#allocation5], 4294967280 }
  0x1c   :  { %172 = dma.done.wait [#allocation3], 256  }
  0x1d   :  { %173 = vsyncadd [#allocation3], 4294967040 }
  0x1e   :  { %37 = sfence }
  0x1f   :  { %s38_s6 = sld [smem:[#allocation2]]  ;;  %s86_s7 = sld [smem:[#allocation2 + $0x2]]  ;;  %v40_v0 = vld [vmem:[#allocation6] sm:$0xff]  ;;  %v41_v1 = vld [vmem:[#allocation6 + $0x8] sm:$0xff]  ;;  %v182_v6 = vmov 0.0  }
  0x20   :  { %s180_s8 = smov [#allocation7]   ;;  %s181_s10 = smov [#allocation8]  }
  0x21   :  { %s62_s9 = sshll.u32 %s180_s8, 4  ;;  %s72_s11 = sshll.u32 %s181_s10, 4  ;;  %s63_s9 = int_to_ptr.vmem [resolvable:$true] %s62_s9  ;;  %s227_s11 = int_to_ptr.vmem [resolvable:$true] %s72_s11 }
  0x22   :  { %s126_s1 = scalar_lea.vmem %s63_s9, 256  ;;  %p131_p12 = scmp.lt.s32.totalorder %s63_s9, %s63_s9 }
  0x23   :  { %p127_p11 = scmp.ne.s32.totalorder %s63_s9, %s126_s1  ;;  %p132_p13 = scmp.lt.s32.totalorder %s126_s1, %s126_s1 }
  0x25   :  { %v42_v2 = vstv %s38_s6  ;;  %v47_v3 = vstv %s86_s7  ;;  %p133_p0 = por %p132_p13, %p131_p12 }
  0x26   :  { %v43_v4 = vmul.f32 %v42_v2, %v40_v0  ;;  %v44_v5 = vmul.f32 %v42_v2, %v41_v1 }
  0x27   :  { %p134_p1 = pnand %p133_p0, %p127_p11 }
  0x28   :  { %45 = vst [vmem:[#allocation7] sm:$0xff] %v43_v4  ;;  %46 = vst [vmem:[#allocation7 + $0x8] sm:$0xff] %v44_v5  ;;  %vm48_vm0 = vcmp.gt.f32.partialorder %v43_v4, %v47_v3  ;;  %vm49_vm1 = vcmp.gt.f32.partialorder %v44_v5, %v47_v3 }
  0x29   :  { %v87_v7 = vsel %vm48_vm0, 1.0, %v182_v6  ;;  %v88_v8 = vsel %vm49_vm1, 1.0, %v182_v6 }
  0x2a   :  { %137 = shalt.err (!%p134_p1)
}
  0x2b   :  { %s138_s14 = scalar_lea.hbm %s260_s2, 256 }
  0x2c   :  { %p139_p2 = scmp.ne.s32.totalorder %s260_s2, %s138_s14  ;;  %p142_p3 = scmp.lt.u32.totalorder %s138_s14, %s260_s2 }
  0x2e   :  { %p144_p4 = pnand %p142_p3, %p139_p2 }
  0x30   :  { %147 = shalt.err (!%p144_p4)
}
  0x31   :  { %65 = dma.vmem_to_hbm [thread:$0]  %s63_s9, 256, %s260_s2, [#allocation4]   ;;  %54 = vst [vmem:[#allocation8] sm:$0xff] %v87_v7  ;;  %55 = vst [vmem:[#allocation8 + $0x8] sm:$0xff] %v88_v8 }
  0x32   :  { %s148_s21 = scalar_lea.vmem %s227_s11, 256  ;;  %p153_p6 = scmp.lt.s32.totalorder %s227_s11, %s227_s11 }
  0x33   :  { %p149_p5 = scmp.ne.s32.totalorder %s227_s11, %s148_s21  ;;  %p154_p7 = scmp.lt.s32.totalorder %s148_s21, %s148_s21 }
  0x35   :  { %p155_p8 = por %p154_p7, %p153_p6 }
  0x37   :  { %p156_p9 = pnand %p155_p8, %p149_p5 }
  0x39   :  { %159 = shalt.err (!%p156_p9)
}
  0x3a   :  { %s160_s24 = scalar_lea.hbm %s261_s3, 256 }
  0x3b   :  { %p161_p10 = scmp.ne.s32.totalorder %s261_s3, %s160_s24  ;;  %p164_p11 = scmp.lt.u32.totalorder %s160_s24, %s261_s3 }
  0x3d   :  { %p166_p12 = pnand %p164_p11, %p161_p10 }
  0x3f   :  { %169 = shalt.err (!%p166_p12)
}
  0x40   :  { %75 = dma.vmem_to_hbm [thread:$0]  %s227_s11, 256, %s261_s3, [#allocation9]  }
  0x41   :  { %174 = dma.done.wait [#allocation4], 256  }
  0x42   :  { %175 = vsyncadd [#allocation4], 4294967040 }
  0x43   :  { %176 = dma.done.wait [#allocation9], 256  }
  0x44   :  { %177 = vsyncadd [#allocation9], 4294967040 }
  0x45   :  { %82 = vsyncpa [#allocation3], 1 }
  0x46   :  { %83 = vsyncpa [#allocation4], 1 }
  0x47   :  { %84 = vsyncpa [#allocation9], 1 }
  0x48   :  { %85 = vsyncpa [#allocation5], 1 }

</bundles_post_ra>
